<compile_context>
chip_gen: v7x
topology: tpu7x:2x2x1
jax: 0.10.0
libtpu: 0.0.40
codegen_flags: <defaults>
</compile_context>

<pallas_src>
import jax
import jax.numpy as jnp
from jax.experimental import pallas as pl
from jax.experimental.pallas import tpu as pltpu

_LANE = 128
_SUBLANE = 8
_VMEM_BUDGET = 48 << 20          # conservative working-set budget (v7x: 64 MiB/TC)
_VMEM_CAP = 60 << 20             # never request more scoped VMEM than this
_SMALL_BATCH_MAX = 128           # <= this many (padded) rows -> single un-gridded call
_TARGET_X_TILE_BYTES = 2 << 20   # ~2 MiB x tile amortizes the ~0.35 us grid-step cost


def _round_up(n: int, m: int) -> int:
    return ((n + m - 1) // m) * m


def _pad2(a, target_shape):
    pads = [(0, t - s) for s, t in zip(a.shape, target_shape)]
    if all(p == (0, 0) for p in pads):
        return a
    return jnp.pad(a, pads)


def _mlp_kernel(x_ref, w1_ref, b1_ref, w2_ref, b2_ref, out_ref):
    # hidden = relu(x @ W1 + b1): bf16 MXU operands, f32 accumulation;
    # bias-add / ReLU stay f32 on the VPU.
    x = x_ref[...].astype(jnp.bfloat16)          # in-kernel cast: no extra HBM pass
    h = jnp.dot(x, w1_ref[...], preferred_element_type=jnp.float32)
    h = jnp.maximum(h + b1_ref[...], 0.0)
    # logits = h @ W2 + b2
    logits = jnp.dot(h.astype(jnp.bfloat16), w2_ref[...],
                     preferred_element_type=jnp.float32)
    out_ref[...] = (logits + b2_ref[...]).astype(out_ref.dtype)


def prepare_params(w1, b1, w2, b2):
    """Pad/cast the static weights ONCE, outside the per-step forward.

    w1: [input_dim, hidden_dim], b1: [hidden_dim],
    w2: [hidden_dim, output_dim], b2: [output_dim]   (transposed nn.Linear weights)
    Zero padding to lane width 128 is mathematically exact (ReLU(0)=0, zero
    rows/cols of W contribute nothing).
    """
    input_dim, hidden_dim = w1.shape
    output_dim = w2.shape[1]
    d_pad = _round_up(input_dim, _LANE)
    h_pad = _round_up(hidden_dim, _LANE)
    n_pad = _round_up(output_dim, _LANE)
    return {
        "w1": _pad2(jnp.asarray(w1, jnp.float32), (d_pad, h_pad)).astype(jnp.bfloat16),
        "b1": _pad2(jnp.asarray(b1, jnp.float32).reshape(1, hidden_dim), (1, h_pad)),
        "w2": _pad2(jnp.asarray(w2, jnp.float32), (h_pad, n_pad)).astype(jnp.bfloat16),
        "b2": _pad2(jnp.asarray(b2, jnp.float32).reshape(1, output_dim), (1, n_pad)),
        "input_dim": input_dim, "output_dim": output_dim,
        "d_pad": d_pad, "h_pad": h_pad, "n_pad": n_pad,
    }


def sgd_network_forward(x_nchw, params, *, batch_tile=None):
    """Forward pass of SGDNetwork (logits only).

    x_nchw : [B, C, H, W] float32
    params : output of prepare_params()
    returns: [B, output_dim] float32 logits
    """
    B = x_nchw.shape[0]
    x = x_nchw.reshape(B, -1)                    # torch .view(B, -1)
    input_dim, output_dim = params["input_dim"], params["output_dim"]
    d_pad, h_pad, n_pad = params["d_pad"], params["h_pad"], params["n_pad"]
    assert x.shape[1] == input_dim
    w1_p, b1_p, w2_p, b2_p = params["w1"], params["b1"], params["w2"], params["b2"]

    b_pad = _round_up(max(B, _SUBLANE), _SUBLANE)

    # Skip the wrapper-side copy of x entirely when it is already aligned
    # (common case: input_dim % 128 == 0 and B % 8 == 0); otherwise pad once
    # and write the copy as bf16 (half-width copy + half-width kernel DMA).
    if x.shape == (b_pad, d_pad):
        x_in = x
    else:
        x_in = _pad2(x.astype(jnp.float32), (b_pad, d_pad)).astype(jnp.bfloat16)
    x_item = x_in.dtype.itemsize

    # Bytes resident in VMEM for every grid step (weights + biases, 1 copy).
    w_bytes = w1_p.size * 2 + w2_p.size * 2 + b1_p.size * 4 + b2_p.size * 4

    def _check_and_limit(tile_rows, n_buf):
        tile_bytes = tile_rows * (d_pad * x_item            # x tile
                                  + n_pad * 2               # bf16 out tile
                                  + h_pad * 4 + n_pad * 4)  # f32 intermediates
        needed = w_bytes + n_buf * tile_bytes
        if needed > _VMEM_BUDGET:
            # TODO(synk): add a K (input_dim) reduction grid axis with an f32
            # accumulator scratch so very large input_dim fits v7x's 64 MiB VMEM.
            raise NotImplementedError(
                f"VMEM working set ~{needed >> 20} MiB exceeds the "
                f"{_VMEM_BUDGET >> 20} MiB budget; needs K-tiling over input_dim.")
        return min(max(int(needed * 1.25) + (4 << 20), 16 << 20), _VMEM_CAP)

    if b_pad <= _SMALL_BATCH_MAX:
        # Small batch: single invocation, everything resident in VMEM, no
        # grid / pipeline / double-buffering overhead.
        limit = _check_and_limit(b_pad, 1)
        vmem_spec = pl.BlockSpec(memory_space=pltpu.MemorySpace.VMEM)
        out = pl.pallas_call(
            _mlp_kernel,
            out_shape=jax.ShapeDtypeStruct((b_pad, n_pad), jnp.bfloat16),
            in_specs=[vmem_spec] * 5,
            out_specs=vmem_spec,
            compiler_params=pltpu.CompilerParams(vmem_limit_bytes=limit),
        )(x_in, w1_p, b1_p, w2_p, b2_p)
    else:
        # Batch tile sized so the x tile is ~2 MiB (near HBM roofline), clamped
        # to [8, 1024]; force at least two tiles so both v7x TensorCores get
        # work via the "parallel" batch axis.
        if batch_tile is None:
            batch_tile = min(
                1024,
                max(_SUBLANE,
                    _round_up(_TARGET_X_TILE_BYTES // (d_pad * x_item), _SUBLANE)))
        tile = min(batch_tile, _round_up(pl.cdiv(b_pad, 2), _SUBLANE))
        grid = (pl.cdiv(b_pad, tile),)           # partial tail tile, no rounding B up
        limit = _check_and_limit(tile, 2)        # x/out tiles are double-buffered
        resident = dict(pipeline_mode=pl.Buffered(1))   # weights never change block
        out = pl.pallas_call(
            _mlp_kernel,
            out_shape=jax.ShapeDtypeStruct((b_pad, n_pad), jnp.bfloat16),
            grid_spec=pltpu.PrefetchScalarGridSpec(
                num_scalar_prefetch=0,
                grid=grid,
                in_specs=[
                    pl.BlockSpec((tile, d_pad), lambda i: (i, 0)),
                    pl.BlockSpec((d_pad, h_pad), lambda i: (0, 0), **resident),
                    pl.BlockSpec((1, h_pad), lambda i: (0, 0), **resident),
                    pl.BlockSpec((h_pad, n_pad), lambda i: (0, 0), **resident),
                    pl.BlockSpec((1, n_pad), lambda i: (0, 0), **resident),
                ],
                out_specs=pl.BlockSpec((tile, n_pad), lambda i: (i, 0)),
            ),
            compiler_params=pltpu.CompilerParams(
                dimension_semantics=("parallel",),   # shard batch tiles on v7x's 2 TCs
                vmem_limit_bytes=limit),
        )(x_in, w1_p, b1_p, w2_p, b2_p)

    # Slice off lane/sublane padding; upcast the real logits to f32.
    return out[:B, :output_dim].astype(jnp.float32)


def init_params(key, input_dim, hidden_dim, output_dim):
    """Deterministic init mimicking nn.Linear default (uniform +/- 1/sqrt(fan_in))."""
    k1, k2, k3, k4 = jax.random.split(key, 4)
    bound1 = 1.0 / jnp.sqrt(jnp.float32(input_dim))
    bound2 = 1.0 / jnp.sqrt(jnp.float32(hidden_dim))
    # stored as [in, out] (transpose of PyTorch's [out, in])
    w1 = jax.random.uniform(k1, (input_dim, hidden_dim), jnp.float32, -bound1, bound1)
    b1 = jax.random.uniform(k2, (hidden_dim,), jnp.float32, -bound1, bound1)
    w2 = jax.random.uniform(k3, (hidden_dim, output_dim), jnp.float32, -bound2, bound2)
    b2 = jax.random.uniform(k4, (output_dim,), jnp.float32, -bound2, bound2)
    return w1, b1, w2, b2


if __name__ == "__main__":
    # Small shapes consistent with the module:
    #   input [B=2, C=4, H=16, W=16] -> input_dim = 4*16*16 = 1024
    #   hidden_dim = 32, output_dim = 8
    B, C, H, W = 2, 4, 16, 16
    input_dim = C * H * W
    hidden_dim = 32
    output_dim = 8

    key = jax.random.PRNGKey(0)
    kx, kp = jax.random.split(key)
    x = jax.random.normal(kx, (B, C, H, W), jnp.float32)
    w1, b1, w2, b2 = init_params(kp, input_dim, hidden_dim, output_dim)

    params = prepare_params(w1, b1, w2, b2)      # pad/cast static weights once
    logits = sgd_network_forward(x, params)
    jax.block_until_ready(logits)

    # Correctness check vs. a plain f32 JAX reference.  Tolerance is loosened
    # because the kernel uses bf16 matmul operands / bf16 logits writeback
    # (f32 accumulation keeps the error bounded).
    x_flat = x.reshape(B, -1)
    ref = jnp.maximum(x_flat @ w1 + b1, 0.0) @ w2 + b2
    assert logits.shape == (B, output_dim)
    assert jnp.allclose(logits, ref, atol=5e-2, rtol=5e-2), (
        float(jnp.max(jnp.abs(logits - ref))))

    print("KERNEL_OK")
</pallas_src>

<mosaic_0001>
module attributes {stable_mosaic.version = 11 : i64} {
  func.func @_mlp_kernel(%arg0: memref<8x1024xbf16, #tpu.memory_space<vmem>>, %arg1: memref<1024x128xbf16, #tpu.memory_space<vmem>>, %arg2: memref<1x128xf32, #tpu.memory_space<vmem>>, %arg3: memref<128x128xbf16, #tpu.memory_space<vmem>>, %arg4: memref<1x128xf32, #tpu.memory_space<vmem>>, %arg5: memref<8x128xbf16, #tpu.memory_space<vmem>>) attributes {dimension_semantics = [], scalar_prefetch = 0 : i64, scratch_operands = 0 : i64, tpu.core_type = #tpu.core_type<tc>} {
    %c0 = arith.constant 0 : index
    %c0_0 = arith.constant 0 : index
    %0 = vector.load %arg0[%c0, %c0_0] : memref<8x1024xbf16, #tpu.memory_space<vmem>>, vector<8x1024xbf16>
    %c0_1 = arith.constant 0 : index
    %c0_2 = arith.constant 0 : index
    %1 = vector.load %arg1[%c0_1, %c0_2] : memref<1024x128xbf16, #tpu.memory_space<vmem>>, vector<1024x128xbf16>
    %cst = arith.constant dense<0.000000e+00> : vector<8x128xf32>
    %2 = tpu.matmul %0, %1, %cst {dimension_numbers = #tpu.dot_dimension_numbers<[1], [0], [0], [1], [0, 0, 1, 1], [], []>} : vector<8x1024xbf16>, vector<1024x128xbf16>, vector<8x128xf32> -> vector<8x128xf32>
    %c0_3 = arith.constant 0 : index
    %c0_4 = arith.constant 0 : index
    %3 = vector.load %arg2[%c0_3, %c0_4] : memref<1x128xf32, #tpu.memory_space<vmem>>, vector<1x128xf32>
    %4 = vector.broadcast %3 : vector<1x128xf32> to vector<8x128xf32>
    %5 = arith.addf %2, %4 : vector<8x128xf32>
    %cst_5 = arith.constant 0.000000e+00 : f32
    %6 = vector.broadcast %cst_5 : f32 to vector<8x128xf32>
    %7 = arith.maximumf %5, %6 : vector<8x128xf32>
    %8 = arith.truncf %7 : vector<8x128xf32> to vector<8x128xbf16>
    %c0_6 = arith.constant 0 : index
    %c0_7 = arith.constant 0 : index
    %9 = vector.load %arg3[%c0_6, %c0_7] : memref<128x128xbf16, #tpu.memory_space<vmem>>, vector<128x128xbf16>
    %cst_8 = arith.constant dense<0.000000e+00> : vector<8x128xf32>
    %10 = tpu.matmul %8, %9, %cst_8 {dimension_numbers = #tpu.dot_dimension_numbers<[1], [0], [0], [1], [0, 0, 1, 1], [], []>} : vector<8x128xbf16>, vector<128x128xbf16>, vector<8x128xf32> -> vector<8x128xf32>
    %c0_9 = arith.constant 0 : index
    %c0_10 = arith.constant 0 : index
    %11 = vector.load %arg4[%c0_9, %c0_10] : memref<1x128xf32, #tpu.memory_space<vmem>>, vector<1x128xf32>
    %12 = vector.broadcast %11 : vector<1x128xf32> to vector<8x128xf32>
    %13 = arith.addf %10, %12 : vector<8x128xf32>
    %14 = arith.truncf %13 : vector<8x128xf32> to vector<8x128xbf16>
    %c0_11 = arith.constant 0 : index
    %c0_12 = arith.constant 0 : index
    %15 = vector.load %arg5[%c0_11, %c0_12] : memref<8x128xbf16, #tpu.memory_space<vmem>>, vector<8x128xbf16>
    tpu.vector_store %arg5[%c0_11, %c0_12], %14 {strides = array<i32>} : memref<8x128xbf16, #tpu.memory_space<vmem>>, vector<8x128xbf16>,
    return
  }
}

</mosaic_0001>

<bundles_post_ra>
// kernel: tpu_custom_call.1
= control target key start
LH: loop header
LB: loop body
LE: loop exit
PB: predicated region body
PF: predicated region fallthrough
CT: control target
= control target key end

     0   :  { %10 = vsyncpa [#allocation3], 0  ;;  %s1382_s0 = inlined_call_operand.hbm [shape: bf16[8,1024], index: 0, kind: input, shape index: {}]   ;;  %s1383_s1 = inlined_call_operand.hbm [shape: bf16[1024,128], index: 1, kind: input, shape index: {}]   ;;  %s1384_s2 = inlined_call_operand.vmem [shape: f32[1,128], index: 2, kind: input, shape index: {}]   ;;  %s1385_s3 = inlined_call_operand.hbm [shape: bf16[128,128], index: 3, kind: input, shape index: {}]   ;;  %s1386_s4 = inlined_call_operand.vmem [shape: f32[1,128], index: 4, kind: input, shape index: {}]   ;;  %s1387_s5 = inlined_call_operand.hbm [shape: bf16[8,128], index: 5, kind: output, shape index: {}]  }
   0x1   :  { %11 = vsyncpa [#allocation6], 0 }
   0x2   :  { %12 = vsyncpa [#allocation4], 0  ;;  %s1284_s18 = smov [#allocation5]   ;;  %s1190_s22 = scalar_lea.hbm %s1383_s1, 8192 }
   0x3   :  { %s28_s19 = sshll.u32 %s1284_s18, 4  ;;  %p1191_p0 = scmp.ne.s32.totalorder %s1383_s1, %s1190_s22  ;;  %s29_s19 = int_to_ptr.vmem [resolvable:$true] %s28_s19 }
   0x4   :  { %p1194_p1 = scmp.lt.u32.totalorder %s1190_s22, %s1383_s1 }
   0x6   :  { %p1196_p2 = pnand %p1194_p1, %p1191_p0 }
   0x8   :  { %1199 = shalt.err (!%p1196_p2)
}
   0x9   :  { %s1200_s27 = scalar_lea.vmem %s29_s19, 8192  ;;  %p1205_p4 = scmp.lt.s32.totalorder %s29_s19, %s29_s19 }
   0xa   :  { %p1201_p3 = scmp.ne.s32.totalorder %s29_s19, %s1200_s27  ;;  %p1206_p5 = scmp.lt.s32.totalorder %s1200_s27, %s1200_s27 }
   0xc   :  { %p1207_p6 = por %p1206_p5, %p1205_p4 }
   0xe   :  { %p1208_p7 = pnand %p1207_p6, %p1201_p3 }
  0x10   :  { %1211 = shalt.err (!%p1208_p7)
}
  0x11   :  { %s1285_s28 = smov 64   ;;  %s1286_s29 = smov 4  }
  0x12   :  { %34 = dma.hbm_to_vmem [thread:$0]  %s1383_s1, 8192, %s29_s19, [#allocation6], %s1285_s28, %s1285_s28, %s1286_s29  }
  0x13   :  { %s1287_s7 = smov [#allocation2]   ;;  %s1288_s9 = smov [#allocation7]  }
  0x14   :  { %s19_s8 = sshll.u32 %s1287_s7, 4  ;;  %s42_s10 = sshll.u32 %s1288_s9, 4  ;;  %s20_s8 = int_to_ptr.vmem [resolvable:$true] %s19_s8  ;;  %s43_s10 = int_to_ptr.vmem [resolvable:$true] %s42_s10 }
  0x15   :  { %s1212_s13 = scalar_lea.hbm %s1382_s0, 512 }
  0x16   :  { %p1213_p8 = scmp.ne.s32.totalorder %s1382_s0, %s1212_s13  ;;  %p1216_p9 = scmp.lt.u32.totalorder %s1212_s13, %s1382_s0 }
  0x18   :  { %p1218_p10 = pnand %p1216_p9, %p1213_p8 }
  0x1a   :  { %1221 = shalt.err (!%p1218_p10)
}
  0x1b   :  { %s1222_s1 = scalar_lea.vmem %s20_s8, 512  ;;  %p1227_p12 = scmp.lt.s32.totalorder %s20_s8, %s20_s8 }
  0x1c   :  { %p1223_p11 = scmp.ne.s32.totalorder %s20_s8, %s1222_s1  ;;  %p1228_p13 = scmp.lt.s32.totalorder %s1222_s1, %s1222_s1 }
  0x1e   :  { %p1229_p0 = por %p1228_p13, %p1227_p12 }
  0x20   :  { %p1230_p1 = pnand %p1229_p0, %p1223_p11 }
  0x22   :  { %1233 = shalt.err (!%p1230_p1)
}
  0x23   :  { %22 = dma.hbm_to_vmem [thread:$0]  %s1382_s0, 512, %s20_s8, [#allocation3]  }
  0x24   :  { %s1234_s22 = scalar_lea.hbm %s1385_s3, 1024 }
  0x25   :  { %p1235_p2 = scmp.ne.s32.totalorder %s1385_s3, %s1234_s22  ;;  %p1238_p3 = scmp.lt.u32.totalorder %s1234_s22, %s1385_s3 }
  0x27   :  { %p1240_p4 = pnand %p1238_p3, %p1235_p2 }
  0x29   :  { %1243 = shalt.err (!%p1240_p4)
}
  0x2a   :  { %s1244_s27 = scalar_lea.vmem %s43_s10, 1024  ;;  %p1249_p6 = scmp.lt.s32.totalorder %s43_s10, %s43_s10 }
  0x2b   :  { %p1245_p5 = scmp.ne.s32.totalorder %s43_s10, %s1244_s27  ;;  %p1250_p7 = scmp.lt.s32.totalorder %s1244_s27, %s1244_s27 }
  0x2d   :  { %p1251_p8 = por %p1250_p7, %p1249_p6 }
  0x2f   :  { %p1252_p9 = pnand %p1251_p8, %p1245_p5 }
  0x31   :  { %1255 = shalt.err (!%p1252_p9)
}
  0x32   :  { %48 = dma.hbm_to_vmem [thread:$0]  %s1385_s3, 1024, %s43_s10, [#allocation6], %s1285_s28, %s1285_s28, %s1286_s29  }
  0x33   :  { %1278 = dma.done.wait [#allocation3], 512  }
  0x34   :  { %1279 = vsyncadd [#allocation3], 4294966784 }
  0x35   :  { %1280 = dma.done.wait [#allocation6], 9216  }
  0x36   :  { %1281 = vsyncadd [#allocation6], 4294958080  ;;  %v1110_v0 = vld [vmem:[#allocation5 + $0x40] sm:$0xff]   ;;  %v1114_v4 = vld [vmem:[#allocation5 + $0x48] sm:$0xff]   ;;  %vm1290_vm0 = vmmov 0   ;;  %s1291_s6 = smov [#allocation8]  }
  0x37   :  { %v1111_v1 = vld [vmem:[#allocation5 + $0xc0] sm:$0xff]   ;;  %985 = vmatprep.subr.bf16.mxu0 %v1110_v0  ;;  %v1115_v5 = vld [vmem:[#allocation5 + $0xc8] sm:$0xff]   ;;  %v1118_v8 = vld [vmem:[#allocation5 + $0x50] sm:$0xff]   ;;  %s893_s7 = sshll.u32 %s1291_s6, 4  ;;  %s894_s7 = int_to_ptr.vmem [resolvable:$true] %s893_s7 }
  0x38   :  { %v1112_v2 = vld [vmem:[#allocation5] sm:$0xff]   ;;  %1007 = vmatprep.subr.bf16.mxu1 %v1111_v1  ;;  %v1116_v6 = vld [vmem:[#allocation5 + $0x8] sm:$0xff]   ;;  %v1119_v9 = vld [vmem:[#allocation5 + $0xd0] sm:$0xff]   ;;  %s1256_s8 = scalar_lea.vmem %s894_s7, 64  ;;  %p1261_p11 = scmp.lt.s32.totalorder %s894_s7, %s894_s7 }
  0x39   :  { %v1113_v3 = vld [vmem:[#allocation5 + $0x80] sm:$0xff]   ;;  %986 = vmatpush3.bf16.msra.mxu0 %v1112_v2  ;;  %v1117_v7 = vld [vmem:[#allocation5 + $0x88] sm:$0xff]   ;;  %v1120_v10 = vld [vmem:[#allocation5 + $0x10] sm:$0xff]   ;;  %p1257_p10 = scmp.ne.s32.totalorder %s894_s7, %s1256_s8  ;;  %p1262_p12 = scmp.lt.s32.totalorder %s1256_s8, %s1256_s8 }
  0x3a   :  { %1008 = vmatpush3.bf16.msra.mxu1 %v1113_v3  ;;  %987 = vmatprep.subr.bf16.mxu0 %v1114_v4  ;;  %v1121_v11 = vld [vmem:[#allocation5 + $0x90] sm:$0xff]   ;;  %v1122_v12 = vld [vmem:[#allocation5 + $0x58] sm:$0xff]   ;;  %v1126_v16 = vld [vmem:[#allocation5 + $0x60] sm:$0xff]  }
  0x3b   :  { %1009 = vmatprep.subr.bf16.mxu1 %v1115_v5  ;;  %v1123_v13 = vld [vmem:[#allocation5 + $0xd8] sm:$0xff]   ;;  %v1127_v17 = vld [vmem:[#allocation5 + $0xe0] sm:$0xff]   ;;  %v1130_v20 = vld [vmem:[#allocation5 + $0x68] sm:$0xff]   ;;  %p1263_p13 = por %p1262_p12, %p1261_p11 }
  0x3c   :  { %v1124_v14 = vld [vmem:[#allocation5 + $0x18] sm:$0xff]   ;;  %v1128_v18 = vld [vmem:[#allocation5 + $0x20] sm:$0xff]   ;;  %v1131_v21 = vld [vmem:[#allocation5 + $0xe8] sm:$0xff]  }
  0x3d   :  { %988 = vmatpush3.bf16.msra.mxu0 %v1116_v6  ;;  %v1125_v15 = vld [vmem:[#allocation5 + $0x98] sm:$0xff]   ;;  %v1129_v19 = vld [vmem:[#allocation5 + $0xa0] sm:$0xff]   ;;  %v1132_v22 = vld [vmem:[#allocation5 + $0x28] sm:$0xff]   ;;  %p1264_p0 = pnand %p1263_p13, %p1257_p10 }
  0x3e   :  { %1010 = vmatpush3.bf16.msra.mxu1 %v1117_v7  ;;  %989 = vmatprep.subr.bf16.mxu0 %v1118_v8  ;;  %v1133_v23 = vld [vmem:[#allocation5 + $0xa8] sm:$0xff]   ;;  %v1134_v24 = vld [vmem:[#allocation5 + $0x70] sm:$0xff]   ;;  %v1138_v28 = vld [vmem:[#allocation5 + $0x78] sm:$0xff]  }
  0x3f   :  { %1011 = vmatprep.subr.bf16.mxu1 %v1119_v9  ;;  %v1135_v25 = vld [vmem:[#allocation5 + $0xf0] sm:$0xff]   ;;  %v1139_v29 = vld [vmem:[#allocation5 + $0xf8] sm:$0xff]   ;;  %v61_v32 = vld [vmem:[#allocation2] sm:$0xff] }
  0x40   :  { %v1136_v26 = vld [vmem:[#allocation5 + $0x30] sm:$0xff]   ;;  %v1140_v30 = vld [vmem:[#allocation5 + $0x38] sm:$0xff]   ;;  %v62_v33 = vld [vmem:[#allocation2 + $0x8] sm:$0xff]  ;;  %v904_v34 = vcombine.low %v61_v32, %v61_v32  ;;  %v905_v35 = vcombine.high %v61_v32, %v61_v32 }
  0x41   :  { %990 = vmatpush3.bf16.msra.mxu0 %v1120_v10  ;;  %v1137_v27 = vld [vmem:[#allocation5 + $0xb0] sm:$0xff]   ;;  %v1141_v31 = vld [vmem:[#allocation5 + $0xb8] sm:$0xff]   ;;  %v906_v36 = vcombine.low %v62_v33, %v62_v33  ;;  %v907_v37 = vcombine.high %v62_v33, %v62_v33  ;;  %v1146_v38 = vld [vmem:[#allocation5 + $0x140] sm:$0xff]  }
  0x42   :  { %1012 = vmatpush3.bf16.msra.mxu1 %v1121_v11  ;;  %991 = vmatprep.subr.bf16.mxu0 %v1122_v12  ;;  %v1147_v39 = vld [vmem:[#allocation5 + $0x1c0] sm:$0xff]   ;;  %v1150_v42 = vld [vmem:[#allocation5 + $0x148] sm:$0xff]   ;;  %v1154_v46 = vld [vmem:[#allocation5 + $0x150] sm:$0xff]  }
  0x43   :  { %1013 = vmatprep.subr.bf16.mxu1 %v1123_v13  ;;  %644 = vmatprep.mubr.bf16.mxu0 %v905_v35  ;;  %v1148_v40 = vld [vmem:[#allocation5 + $0x100] sm:$0xff]   ;;  %v1151_v43 = vld [vmem:[#allocation5 + $0x1c8] sm:$0xff]   ;;  %v1155_v47 = vld [vmem:[#allocation5 + $0x1d0] sm:$0xff]   ;;  %v1289_v13 = vmov 0.0  }
  0x44   :  { %684 = vmatprep.mubr.bf16.mxu1 %v907_v37  ;;  %v1149_v41 = vld [vmem:[#allocation5 + $0x180] sm:$0xff]   ;;  %v1152_v44 = vld [vmem:[#allocation5 + $0x108] sm:$0xff]   ;;  %v1156_v48 = vld [vmem:[#allocation5 + $0x110] sm:$0xff]  }
  0x45   :  { %992 = vmatpush3.bf16.msra.mxu0 %v1124_v14  ;;  %v1153_v45 = vld [vmem:[#allocation5 + $0x188] sm:$0xff]   ;;  %v1157_v49 = vld [vmem:[#allocation5 + $0x190] sm:$0xff]   ;;  %v1158_v50 = vld [vmem:[#allocation5 + $0x158] sm:$0xff]  }
  0x46   :  { %1014 = vmatpush3.bf16.msra.mxu1 %v1125_v15  ;;  %993 = vmatprep.subr.bf16.mxu0 %v1126_v16  ;;  %v1159_v51 = vld [vmem:[#allocation5 + $0x1d8] sm:$0xff]   ;;  %v1162_v54 = vld [vmem:[#allocation5 + $0x160] sm:$0xff]   ;;  %v1166_v58 = vld [vmem:[#allocation5 + $0x168] sm:$0xff]  }
  0x47   :  { %1015 = vmatprep.subr.bf16.mxu1 %v1127_v17  ;;  %v1160_v52 = vld [vmem:[#allocation5 + $0x118] sm:$0xff]   ;;  %v1163_v55 = vld [vmem:[#allocation5 + $0x1e0] sm:$0xff]   ;;  %v1167_v59 = vld [vmem:[#allocation5 + $0x1e8] sm:$0xff]  }
  0x48   :  { %v1161_v53 = vld [vmem:[#allocation5 + $0x198] sm:$0xff]   ;;  %v1164_v56 = vld [vmem:[#allocation5 + $0x120] sm:$0xff]   ;;  %v1168_v60 = vld [vmem:[#allocation5 + $0x128] sm:$0xff]  }
  0x49   :  { %994 = vmatpush3.bf16.msra.mxu0 %v1128_v18  ;;  %v1165_v57 = vld [vmem:[#allocation5 + $0x1a0] sm:$0xff]   ;;  %v1169_v61 = vld [vmem:[#allocation5 + $0x1a8] sm:$0xff]   ;;  %v1170_v62 = vld [vmem:[#allocation5 + $0x170] sm:$0xff]  }
  0x4a   :  { %1016 = vmatpush3.bf16.msra.mxu1 %v1129_v19  ;;  %995 = vmatprep.subr.bf16.mxu0 %v1130_v20  ;;  %v1171_v63 = vld [vmem:[#allocation5 + $0x1f0] sm:$0xff]   ;;  %v1174_v2 = vld [vmem:[#allocation5 + $0x178] sm:$0xff]   ;;  %v1182_v12 = vld [vmem:[#allocation7] sm:$0xff]  }
  0x4b   :  { %1017 = vmatprep.subr.bf16.mxu1 %v1131_v21  ;;  %v1172_v0 = vld [vmem:[#allocation5 + $0x130] sm:$0xff]   ;;  %v1175_v3 = vld [vmem:[#allocation5 + $0x1f8] sm:$0xff]   ;;  %v1183_v14 = vld [vmem:[#allocation7 + $0x8] sm:$0xff]  }
  0x4c   :  { %v1173_v1 = vld [vmem:[#allocation5 + $0x1b0] sm:$0xff]   ;;  %v1176_v4 = vld [vmem:[#allocation5 + $0x138] sm:$0xff]   ;;  %v1186_v17 = vld [vmem:[#allocation7 + $0x20] sm:$0xff]  }
  0x4d   :  { %996 = vmatpush3.bf16.msra.mxu0 %v1132_v22  ;;  %v1177_v5 = vld [vmem:[#allocation5 + $0x1b8] sm:$0xff]   ;;  %v63_v6 = vld [vmem:[#allocation2 + $0x10] sm:$0xff]  ;;  %v1187_v18 = vld [vmem:[#allocation7 + $0x28] sm:$0xff]  }
  0x4e   :  { %1018 = vmatpush3.bf16.msra.mxu1 %v1133_v23  ;;  %997 = vmatprep.subr.bf16.mxu0 %v1134_v24  ;;  %v908_v7 = vcombine.low %v63_v6, %v63_v6  ;;  %v909_v8 = vcombine.high %v63_v6, %v63_v6  ;;  %v64_v9 = vld [vmem:[#allocation2 + $0x18] sm:$0xff]  ;;  %v1184_v15 = vld [vmem:[#allocation7 + $0x10] sm:$0xff]   ;;  %v903_v23 = vld [vmem:[%s1384_s2] ss:$0 sm:$0xff] }
  0x4f   :  { %1019 = vmatprep.subr.bf16.mxu1 %v1135_v25  ;;  %v910_v10 = vcombine.low %v64_v9, %v64_v9  ;;  %v911_v11 = vcombine.high %v64_v9, %v64_v9  ;;  %v1185_v16 = vld [vmem:[#allocation7 + $0x18] sm:$0xff]   ;;  %v1188_v19 = vld [vmem:[#allocation7 + $0x30] sm:$0xff]  }
  0x50   :  { %v1189_v20 = vld [vmem:[#allocation7 + $0x38] sm:$0xff]  }
  0x51   :  { %998 = vmatpush3.bf16.msra.mxu0 %v1136_v26 }
  0x52   :  { %1020 = vmatpush3.bf16.msra.mxu1 %v1137_v27  ;;  %999 = vmatprep.subr.bf16.mxu0 %v1138_v28 }
  0x53   :  { %1021 = vmatprep.subr.bf16.mxu1 %v1139_v29 }
  0x55   :  { %1000 = vmatpush3.bf16.msra.mxu0 %v1140_v30 }
  0x56   :  { %1022 = vmatpush3.bf16.msra.mxu1 %v1141_v31  ;;  %1029 = vmatprep.subr.bf16.mxu0 %v1146_v38 }
  0x57   :  { %1051 = vmatprep.subr.bf16.mxu1 %v1147_v39 }
  0x58   :  { %645 = vmatmul.mubr.bf16.vlgmr.msra.gmra.mrb[0].mxu0 %v904_v34 }
  0x59   :  { %685 = vmatmul.mubr.bf16.vlgmr.msra.gmra.mrb[0].mxu1 %v906_v36  ;;  %1030 = vmatpush3.bf16.msra.mxu0 %v1148_v40 }
  0x5a   :  { %1052 = vmatpush3.bf16.msra.mxu1 %v1149_v41  ;;  %1031 = vmatprep.subr.bf16.mxu0 %v1150_v42 }
  0x5b   :  { %1053 = vmatprep.subr.bf16.mxu1 %v1151_v43  ;;  %724 = vmatprep.mubr.bf16.mxu0 %v909_v8 }
  0x5c   :  { %764 = vmatprep.mubr.bf16.mxu1 %v911_v11 }
  0x5d   :  { %1032 = vmatpush3.bf16.msra.mxu0 %v1152_v44 }
  0x5e   :  { %1054 = vmatpush3.bf16.msra.mxu1 %v1153_v45  ;;  %1033 = vmatprep.subr.bf16.mxu0 %v1154_v46 }
  0x5f   :  { %1055 = vmatprep.subr.bf16.mxu1 %v1155_v47 }
  0x61   :  { %1034 = vmatpush3.bf16.msra.mxu0 %v1156_v48  ;;  %v976_v48 = vld [vmem:[%s1386_s4] ss:$0 sm:$0xff] }
  0x62   :  { %1056 = vmatpush3.bf16.msra.mxu1 %v1157_v49  ;;  %1035 = vmatprep.subr.bf16.mxu0 %v1158_v50 }
  0x63   :  { %1057 = vmatprep.subr.bf16.mxu1 %v1159_v51 }
  0x65   :  { %1036 = vmatpush3.bf16.msra.mxu0 %v1160_v52 }
  0x66   :  { %1058 = vmatpush3.bf16.msra.mxu1 %v1161_v53  ;;  %1037 = vmatprep.subr.bf16.mxu0 %v1162_v54 }
  0x67   :  { %1059 = vmatprep.subr.bf16.mxu1 %v1163_v55 }
  0x69   :  { %1038 = vmatpush3.bf16.msra.mxu0 %v1164_v56 }
  0x6a   :  { %1060 = vmatpush3.bf16.msra.mxu1 %v1165_v57  ;;  %1039 = vmatprep.subr.bf16.mxu0 %v1166_v58 }
  0x6b   :  { %1061 = vmatprep.subr.bf16.mxu1 %v1167_v59 }
  0x6d   :  { %1040 = vmatpush3.bf16.msra.mxu0 %v1168_v60 }
  0x6e   :  { %1062 = vmatpush3.bf16.msra.mxu1 %v1169_v61  ;;  %1041 = vmatprep.subr.bf16.mxu0 %v1170_v62 }
  0x6f   :  { %1063 = vmatprep.subr.bf16.mxu1 %v1171_v63 }
  0x71   :  { %1042 = vmatpush3.bf16.msra.mxu0 %v1172_v0 }
  0x72   :  { %1064 = vmatpush3.bf16.msra.mxu1 %v1173_v1  ;;  %1043 = vmatprep.subr.bf16.mxu0 %v1174_v2 }
  0x73   :  { %1065 = vmatprep.subr.bf16.mxu1 %v1175_v3 }
  0x75   :  { %1044 = vmatpush3.bf16.msra.mxu0 %v1176_v4 }
  0x76   :  { %1066 = vmatpush3.bf16.msra.mxu1 %v1177_v5  ;;  %1082 = vmatprep.subr.bf16.mxu0 %v1289_v13 }
  0x78   :  { %725 = vmatmul.mubr.bf16.vlgmr.msra.gmra.mrb[4].mxu0 %v908_v7 }
  0x79   :  { %765 = vmatmul.mubr.bf16.vlgmr.msra.gmra.mrb[4].mxu1 %v910_v10  ;;  %1083 = vmatpush3.bf16.msra.mxu0 %v1182_v12 }
  0x7a   :  { %1084 = vmatprep.subr.bf16.mxu0 %v1289_v13  ;;  %1098 = vmatprep.mubr.msk.bf16.mxu0 %vm1290_vm0, %v1289_v13 }
  0x7d   :  { %1085 = vmatpush3.bf16.msra.mxu0 %v1183_v14 }
  0x7e   :  { %1086 = vmatprep.subr.bf16.mxu0 %v1289_v13 }
  0x81   :  { %1087 = vmatpush3.bf16.msra.mxu0 %v1184_v15 }
  0x82   :  { %1088 = vmatprep.subr.bf16.mxu0 %v1289_v13 }
  0x85   :  { %1089 = vmatpush3.bf16.msra.mxu0 %v1185_v16 }
  0x86   :  { %1090 = vmatprep.subr.bf16.mxu0 %v1289_v13 }
  0x89   :  { %1091 = vmatpush3.bf16.msra.mxu0 %v1186_v17 }
  0x8a   :  { %1092 = vmatprep.subr.bf16.mxu0 %v1289_v13 }
  0x8d   :  { %1093 = vmatpush3.bf16.msra.mxu0 %v1187_v18 }
  0x8e   :  { %1094 = vmatprep.subr.bf16.mxu0 %v1289_v13 }
  0x91   :  { %1095 = vmatpush3.bf16.msra.mxu0 %v1188_v19 }
  0x92   :  { %1096 = vmatprep.subr.bf16.mxu0 %v1289_v13 }
  0x95   :  { %1097 = vmatpush3.bf16.msra.mxu0 %v1189_v20 }
 0x12b   :  { %v1001_v21 = vpop.f32.mrb[0].mxu0 }
 0x12c   :  { %v1023_v22 = vpop.f32.mrb[0].mxu1  ;;  %v1002_v24 = vpop.f32.mrb[1].mxu0 }
 0x12d   :  { %v1024_v25 = vpop.f32.mrb[1].mxu1  ;;  %v1003_v26 = vadd.f32 %v1002_v24, %v1001_v21  ;;  %v1004_v28 = vpop.f32.mrb[2].mxu0 }
 0x12e   :  { %v1025_v27 = vadd.f32 %v1024_v25, %v1023_v22  ;;  %v1026_v29 = vpop.f32.mrb[2].mxu1  ;;  %v1005_v30 = vpop.f32.mrb[3].mxu0 }
 0x12f   :  { %v1027_v31 = vpop.f32.mrb[3].mxu1  ;;  %v647_v32 = vadd.f32 %v1003_v26, %v903_v23 }
 0x131   :  { %v687_v33 = vadd.f32 %v1025_v27, %v647_v32 }
 0x14b   :  { %v1045_v34 = vpop.f32.mrb[4].mxu0 }
 0x14c   :  { %v1067_v35 = vpop.f32.mrb[4].mxu1  ;;  %v1046_v36 = vpop.f32.mrb[5].mxu0 }
 0x14d   :  { %v1068_v37 = vpop.f32.mrb[5].mxu1  ;;  %v1047_v38 = vadd.f32 %v1046_v36, %v1045_v34  ;;  %v1048_v40 = vpop.f32.mrb[6].mxu0 }
 0x14e   :  { %v1069_v39 = vadd.f32 %v1068_v37, %v1067_v35  ;;  %v1070_v41 = vpop.f32.mrb[6].mxu1  ;;  %v1049_v42 = vpop.f32.mrb[7].mxu0 }
 0x14f   :  { %v1071_v43 = vpop.f32.mrb[7].mxu1  ;;  %v727_v44 = vadd.f32 %v1047_v38, %v687_v33 }
 0x151   :  { %v767_v45 = vadd.f32 %v1069_v39, %v727_v44 }
 0x153   :  { %v772_v46 = vmax.f32 %v767_v45, 0.0 }
 0x155   :  { %v773_v47 = vpack.c.bf16 %v772_v46, %v772_v46 }
 0x157   :  { %1099 = vmatmul.mubr.bf16.vlgmr.msra.gmra.mrb[8].mxu0 %v773_v47 }
 0x22a   :  { %v879_v49 = vpop.f32.mrb[8].mxu0 }
 0x22b   :  { %v880_v50 = vadd.f32 %v976_v48, %v879_v49  ;;  %v1100_v51 = vpop.f32.mrb[9].mxu0 }
 0x22c   :  { %v882_v52 = vpop.f32.mrb[10].mxu0 }
 0x22d   :  { %v885_v53 = vpack.c.bf16 %v880_v50, %v880_v50  ;;  %v1101_v54 = vpop.f32.mrb[11].mxu0 }
 0x22f   :  { %886 = vst [vmem:[#allocation8] sm:$0xf] %v885_v53 }
 0x230   :  { %1267 = shalt.err (!%p1264_p0)
}
 0x231   :  { %s1268_s4 = scalar_lea.hbm %s1387_s5, 64 }
 0x232   :  { %p1269_p1 = scmp.ne.s32.totalorder %s1387_s5, %s1268_s4  ;;  %p1272_p2 = scmp.lt.u32.totalorder %s1268_s4, %s1387_s5 }
 0x234   :  { %p1274_p3 = pnand %p1272_p2, %p1269_p1 }
 0x236   :  { %1277 = shalt.err (!%p1274_p3)
}
 0x237   :  { %896 = dma.vmem_to_hbm [thread:$0]  %s894_s7, 64, %s1387_s5, [#allocation4]  }
 0x238   :  { %1282 = dma.done.wait [#allocation4], 64  }
 0x239   :  { %1283 = vsyncadd [#allocation4], 4294967232 }
 0x23a   :  { %900 = vsyncpa [#allocation3], 1 }
 0x23b   :  { %901 = vsyncpa [#allocation6], 1 }
 0x23c   :  { %902 = vsyncpa [#allocation4], 1 }

</bundles_post_ra>
